<compile_context>
chip_gen: v7x
topology: tpu7x:2x2x1
jax: 0.10.0
libtpu: 0.0.40
codegen_flags: <defaults>
</compile_context>

<pallas_src>
import numpy as np
import jax
import jax.numpy as jnp
from jax import lax
from jax.experimental import pallas as pl
from jax.experimental.pallas import tpu as pltpu


def _make_loss_kernel(Tm1: int, block_students: int):
    SB = block_students

    def kernel(pred_ref, delta_ref, a_ref, p_ref, start_ref, loss_ref):
        pred = pred_ref[...]                              # (SB, Tm1, Q) f32 (already trimmed)
        delta = delta_ref[...].astype(jnp.float32)        # (SB, Tm1, Q)     (already shifted)
        a = a_ref[...]                                    # (SB, Tm1)  f32 (precomputed)

        # p[s, t] = pred[s, t, :] . delta[s, t+1, :]   (diagonal of per-student mm)
        p = jnp.sum(pred * delta, axis=-1)                # (SB, Tm1)  VPU mul + XLU lane reduce

        # PyTorch trim: keep the suffix starting at the first t with p > 0
        # (keep everything if there is no such t).
        idx = lax.broadcasted_iota(jnp.int32, (SB, Tm1), 1)
        cand = jnp.where(p > 0.0, idx, Tm1)
        start = jnp.min(cand, axis=1, keepdims=True)      # (SB, 1) int32
        start = jnp.where(start == Tm1, 0, start)
        mask_f = (idx >= start).astype(jnp.float32)       # (SB, Tm1)

        # BCELoss with PyTorch's -100 log clamp; mean over kept entries.
        log_p = jnp.maximum(jnp.log(p), -100.0)
        log_1mp = jnp.maximum(jnp.log(1.0 - p), -100.0)
        bce = -(a * log_p + (1.0 - a) * log_1mp)
        num = jnp.sum(mask_f * bce, axis=1, keepdims=True)   # (SB, 1)
        cnt = jnp.sum(mask_f, axis=1, keepdims=True)         # (SB, 1), >= 1 since T >= 2
        loss_ref[...] = num / cnt                            # exact divide (perf review)

        p_ref[...] = p
        start_ref[...] = start

    return kernel


def _pick_block_students(B: int, Tm1: int, Q: int) -> int:
    """Students per grid step: multiple of 8, sized so double-buffered pipeline
    buffers PLUS in-kernel f32 temporaries stay well under the scoped VMEM
    limit (v7x has only 64 MiB physical per TC), while keeping >= 4 grid steps
    when the batch allows it (2 per TensorCore on v7x megacore)."""
    io_bytes = (
        Tm1 * Q * 4        # pred (f32)
        + Tm1 * Q * 1      # delta (int8)
        + Tm1 * 4          # a (f32)
        + Tm1 * 4 + 4 + 4  # p / start / loss outputs
    )
    tmp_bytes = 2 * Tm1 * Q * 4 + 8 * Tm1 * 4   # delta upcast, product, bce/mask slabs
    per_student = 2 * io_bytes + tmp_bytes       # x2: double-buffered pipeline
    budget = 20 * 1024 * 1024
    sb_max = max(8, (budget // per_student) // 8 * 8)
    b_pad8 = ((B + 7) // 8) * 8
    sb_max = min(sb_max, b_pad8)
    n_steps = max(4, -(-b_pad8 // sb_max))       # want >= 4 steps ...
    n_steps = min(n_steps, b_pad8 // 8)          # ... but each step needs >= 8 students
    sb = -(-b_pad8 // n_steps)
    sb = ((sb + 7) // 8) * 8
    return int(min(sb, b_pad8))


def pallas_loss(pred, batch, num_of_questions, max_step):
    Q = num_of_questions
    T = max_step
    Tm1 = T - 1
    assert T >= 2, "max_step must be >= 2 (otherwise there are no targets)"
    B = pred.shape[0]

    # Wrapper-side prep (single cheap XLA pass, exact for 0/1 one-hot data):
    #   * pred trimmed to the first T-1 steps (f32)
    #   * delta = correct + wrong, shifted by one step, stored as int8
    #   * a[s, t] = floor((sum_q (correct - wrong)[s, t+1, q] + 1) / 2)  (f32)
    pred_f = pred.astype(jnp.float32)[:, :Tm1, :]                         # (B, Tm1, Q)
    corr = batch[:, :, 0:Q].astype(jnp.float32)
    wrong = batch[:, :, Q:2 * Q].astype(jnp.float32)
    delta = (corr + wrong)[:, 1:, :].astype(jnp.int8)                     # (B, Tm1, Q)
    a_all = jnp.floor((jnp.sum(corr - wrong, axis=-1) + 1.0) * 0.5)[:, 1:]  # (B, Tm1)
    a_all = a_all.astype(jnp.float32)

    SB = _pick_block_students(B, Tm1, Q)
    B_pad = pl.cdiv(B, SB) * SB
    if B_pad != B:
        pad3 = ((0, B_pad - B), (0, 0), (0, 0))
        pad2 = ((0, B_pad - B), (0, 0))
        pred_f = jnp.pad(pred_f, pad3)
        delta = jnp.pad(delta, pad3)
        a_pad = jnp.pad(a_all, pad2)     # padded students contribute exactly 0 loss
    else:
        a_pad = a_all

    kernel = _make_loss_kernel(Tm1, SB)
    out_shapes = (
        jax.ShapeDtypeStruct((B_pad, Tm1), jnp.float32),   # p per student
        jax.ShapeDtypeStruct((B_pad, 1), jnp.int32),       # trim start index per student
        jax.ShapeDtypeStruct((B_pad, 1), jnp.float32),     # per-student mean BCE
    )
    p_out, start_out, loss_out = pl.pallas_call(
        kernel,
        out_shape=out_shapes,
        grid_spec=pltpu.PrefetchScalarGridSpec(
            num_scalar_prefetch=0,
            grid=(B_pad // SB,),
            in_specs=[
                pl.BlockSpec((SB, Tm1, Q), lambda s: (s, 0, 0)),
                pl.BlockSpec((SB, Tm1, Q), lambda s: (s, 0, 0)),
                pl.BlockSpec((SB, Tm1), lambda s: (s, 0)),
            ],
            out_specs=(
                pl.BlockSpec((SB, Tm1), lambda s: (s, 0)),
                pl.BlockSpec((SB, 1), lambda s: (s, 0)),
                pl.BlockSpec((SB, 1), lambda s: (s, 0)),
            ),
        ),
        compiler_params=pltpu.CompilerParams(
            dimension_semantics=("parallel",),          # no resident accumulator
            vmem_limit_bytes=32 * 1024 * 1024,
        ),
    )(pred_f, delta, a_pad)

    loss = jnp.sum(loss_out[:B, 0])
    return loss, p_out[:B], a_all, start_out[:B, 0]


def loss_func_forward(pred, batch, num_of_questions, max_step):
    """Mimics lossFunc.forward -> (loss, prediction, ground_truth)."""
    loss, p_all, a_all, start_all = pallas_loss(pred, batch, num_of_questions, max_step)
    jax.block_until_ready((loss, p_all, a_all, start_all))
    # TODO(synk): the per-student variable-length trim + torch.cat has no
    # static-shape Pallas equivalent; assembled on host from p / a / start.
    p_np = np.asarray(p_all)
    a_np = np.asarray(a_all)
    st_np = np.asarray(start_all)
    prediction = np.concatenate([p_np[s, st_np[s]:] for s in range(p_np.shape[0])])
    ground_truth = np.concatenate([a_np[s, st_np[s]:] for s in range(a_np.shape[0])])
    return float(loss), prediction, ground_truth


def reference_forward(pred, batch, Q, T):
    """Pure-numpy port of the PyTorch forward, for verification."""
    pred = np.asarray(pred, dtype=np.float64)
    batch = np.asarray(batch, dtype=np.float64)
    total = 0.0
    preds, gts = [], []
    for s in range(pred.shape[0]):
        delta = batch[s][:, 0:Q] + batch[s][:, Q:2 * Q]
        temp = pred[s][:T - 1] @ delta[1:].T
        p = np.diagonal(temp).copy()
        a = np.floor((np.sum(batch[s][:, 0:Q] - batch[s][:, Q:2 * Q], axis=1) + 1) / 2)[1:]
        start = 0
        for i in range(len(p)):
            if p[i] > 0:
                start = i
                break
        p, a = p[start:], a[start:]
        logp = np.maximum(np.log(np.maximum(p, 1e-300)), -100.0)
        log1mp = np.maximum(np.log(np.maximum(1.0 - p, 1e-300)), -100.0)
        bce = -(a * logp + (1.0 - a) * log1mp)
        total += bce.mean()
        preds.append(p)
        gts.append(a)
    return total, np.concatenate(preds), np.concatenate(gts)


if __name__ == "__main__":
    B, T, Q = 2, 8, 32   # batch of students, max_step, num_of_questions

    key = jax.random.PRNGKey(0)
    k1, k2, k3 = jax.random.split(key, 3)

    # pred: sigmoid outputs in (0, 1), like the DKT model would produce.
    pred = jax.nn.sigmoid(jax.random.normal(k1, (B, T, Q), dtype=jnp.float32))

    # batch: DKT one-hot encoding; student 1 has leading + trailing padding to
    # exercise the p>0 trim and zero-padded BCE terms.
    qs = jax.random.randint(k2, (B, T), 0, Q)
    correct = jax.random.bernoulli(k3, 0.6, (B, T))
    start_t = jnp.array([0, 2])
    end_t = jnp.array([T, T - 1])
    steps = jnp.arange(T)
    valid = (steps[None, :] >= start_t[:, None]) & (steps[None, :] < end_t[:, None])
    onehot = jax.nn.one_hot(qs, Q, dtype=jnp.float32)
    correct_f = correct.astype(jnp.float32)[..., None]
    valid_f = valid.astype(jnp.float32)[..., None]
    batch = jnp.concatenate(
        [onehot * correct_f * valid_f, onehot * (1.0 - correct_f) * valid_f], axis=-1)

    loss, prediction, ground_truth = loss_func_forward(pred, batch, Q, T)

    ref_loss, ref_pred, ref_gt = reference_forward(pred, batch, Q, T)
    assert np.allclose(loss, ref_loss, rtol=1e-5, atol=1e-5), (loss, ref_loss)
    assert prediction.shape == ref_pred.shape
    assert np.allclose(prediction, ref_pred, atol=1e-5)
    assert np.allclose(ground_truth, ref_gt, atol=1e-5)

    print("KERNEL_OK")
</pallas_src>

<mosaic_0001>
module attributes {stable_mosaic.version = 11 : i64} {
  func.func @kernel(%arg0: i32, %arg1: memref<8x7x32xf32, #tpu.memory_space<vmem>>, %arg2: memref<8x7x32xi8, #tpu.memory_space<vmem>>, %arg3: memref<8x7xf32, #tpu.memory_space<vmem>>, %arg4: memref<8x7xf32, #tpu.memory_space<vmem>>, %arg5: memref<8x1xi32, #tpu.memory_space<vmem>>, %arg6: memref<8x1xf32, #tpu.memory_space<vmem>>) attributes {dimension_semantics = [#tpu.dimension_semantics<parallel>], iteration_bounds = array<i64: 1>, scalar_prefetch = 0 : i64, scratch_operands = 0 : i64, tpu.core_type = #tpu.core_type<tc>, window_params = [{transform_indices = @transform_0, window_bounds = array<i64: 8, 7, 32>}, {transform_indices = @transform_1, window_bounds = array<i64: 8, 7, 32>}, {transform_indices = @transform_2, window_bounds = array<i64: 8, 7>}, {transform_indices = @transform_3, window_bounds = array<i64: 8, 7>}, {transform_indices = @transform_4, window_bounds = array<i64: 8, 1>}, {transform_indices = @transform_5, window_bounds = array<i64: 8, 1>}]} {
    %c0 = arith.constant 0 : index
    %c0_0 = arith.constant 0 : index
    %c0_1 = arith.constant 0 : index
    %0 = vector.load %arg1[%c0, %c0_0, %c0_1] : memref<8x7x32xf32, #tpu.memory_space<vmem>>, vector<8x7x32xf32>
    %c0_2 = arith.constant 0 : index
    %c0_3 = arith.constant 0 : index
    %c0_4 = arith.constant 0 : index
    %1 = vector.load %arg2[%c0_2, %c0_3, %c0_4] : memref<8x7x32xi8, #tpu.memory_space<vmem>>, vector<8x7x32xi8>
    %2 = arith.sitofp %1 : vector<8x7x32xi8> to vector<8x7x32xf32>
    %c0_5 = arith.constant 0 : index
    %c0_6 = arith.constant 0 : index
    %3 = vector.load %arg3[%c0_5, %c0_6] : memref<8x7xf32, #tpu.memory_space<vmem>>, vector<8x7xf32>
    %4 = arith.mulf %0, %2 : vector<8x7x32xf32>
    %cst = arith.constant dense<0.000000e+00> : vector<8x7xf32>
    %5 = vector.multi_reduction <add>, %4, %cst [2] : vector<8x7x32xf32> to vector<8x7xf32>
    %6 = tpu.iota {dimensions = array<i32: 1>} : vector<8x7xi32>
    %cst_7 = arith.constant 0.000000e+00 : f32
    %7 = vector.broadcast %cst_7 : f32 to vector<8x7xf32>
    %8 = arith.cmpf ogt, %5, %7 : vector<8x7xf32>
    %c7_i32 = arith.constant 7 : i32
    %9 = vector.broadcast %c7_i32 : i32 to vector<8x7xi32>
    %10 = arith.select %8, %6, %9 : vector<8x7xi1>, vector<8x7xi32>
    %cst_8 = arith.constant dense<2147483647> : vector<8xi32>
    %11 = vector.multi_reduction <minsi>, %10, %cst_8 [1] : vector<8x7xi32> to vector<8xi32>
    %12 = vector.shape_cast %11 : vector<8xi32> to vector<8x1xi32>
    %c7_i32_9 = arith.constant 7 : i32
    %13 = vector.broadcast %c7_i32_9 : i32 to vector<8x1xi32>
    %14 = arith.cmpi eq, %12, %13 : vector<8x1xi32>
    %c0_i32 = arith.constant 0 : i32
    %15 = vector.broadcast %c0_i32 : i32 to vector<8x1xi32>
    %16 = arith.select %14, %15, %12 : vector<8x1xi1>, vector<8x1xi32>
    %17 = vector.broadcast %16 : vector<8x1xi32> to vector<8x7xi32>
    %18 = arith.cmpi sge, %6, %17 : vector<8x7xi32>
    %19 = arith.extui %18 : vector<8x7xi1> to vector<8x7xi32>
    %20 = arith.sitofp %19 : vector<8x7xi32> to vector<8x7xf32>
    %21 = math.log %5 : vector<8x7xf32>
    %cst_10 = arith.constant -1.000000e+02 : f32
    %22 = vector.broadcast %cst_10 : f32 to vector<8x7xf32>
    %23 = arith.maximumf %21, %22 : vector<8x7xf32>
    %cst_11 = arith.constant 1.000000e+00 : f32
    %24 = vector.broadcast %cst_11 : f32 to vector<8x7xf32>
    %25 = arith.subf %24, %5 : vector<8x7xf32>
    %26 = math.log %25 : vector<8x7xf32>
    %cst_12 = arith.constant -1.000000e+02 : f32
    %27 = vector.broadcast %cst_12 : f32 to vector<8x7xf32>
    %28 = arith.maximumf %26, %27 : vector<8x7xf32>
    %29 = arith.mulf %3, %23 : vector<8x7xf32>
    %cst_13 = arith.constant 1.000000e+00 : f32
    %30 = vector.broadcast %cst_13 : f32 to vector<8x7xf32>
    %31 = arith.subf %30, %3 : vector<8x7xf32>
    %32 = arith.mulf %31, %28 : vector<8x7xf32>
    %33 = arith.addf %29, %32 : vector<8x7xf32>
    %cst_14 = arith.constant 0.000000e+00 : f32
    %34 = vector.broadcast %cst_14 : f32 to vector<8x7xf32>
    %35 = arith.subf %34, %33 : vector<8x7xf32>
    %36 = arith.mulf %20, %35 : vector<8x7xf32>
    %cst_15 = arith.constant dense<0.000000e+00> : vector<8xf32>
    %37 = vector.multi_reduction <add>, %36, %cst_15 [1] : vector<8x7xf32> to vector<8xf32>
    %38 = vector.shape_cast %37 : vector<8xf32> to vector<8x1xf32>
    %cst_16 = arith.constant dense<0.000000e+00> : vector<8xf32>
    %39 = vector.multi_reduction <add>, %20, %cst_16 [1] : vector<8x7xf32> to vector<8xf32>
    %40 = vector.shape_cast %39 : vector<8xf32> to vector<8x1xf32>
    %41 = arith.divf %38, %40 : vector<8x1xf32>
    %c0_17 = arith.constant 0 : index
    %c0_18 = arith.constant 0 : index
    %42 = vector.load %arg6[%c0_17, %c0_18] : memref<8x1xf32, #tpu.memory_space<vmem>>, vector<8x1xf32>
    tpu.vector_store %arg6[%c0_17, %c0_18], %41 {strides = array<i32>} : memref<8x1xf32, #tpu.memory_space<vmem>>, vector<8x1xf32>,
    %c0_19 = arith.constant 0 : index
    %c0_20 = arith.constant 0 : index
    %43 = vector.load %arg4[%c0_19, %c0_20] : memref<8x7xf32, #tpu.memory_space<vmem>>, vector<8x7xf32>
    tpu.vector_store %arg4[%c0_19, %c0_20], %5 {strides = array<i32>} : memref<8x7xf32, #tpu.memory_space<vmem>>, vector<8x7xf32>,
    %c0_21 = arith.constant 0 : index
    %c0_22 = arith.constant 0 : index
    %44 = vector.load %arg5[%c0_21, %c0_22] : memref<8x1xi32, #tpu.memory_space<vmem>>, vector<8x1xi32>
    tpu.vector_store %arg5[%c0_21, %c0_22], %16 {strides = array<i32>} : memref<8x1xi32, #tpu.memory_space<vmem>>, vector<8x1xi32>,
    return
  }
  func.func @transform_0(%arg0: i32) -> (i32, i32, i32) {
    %c0_i32 = arith.constant 0 : i32
    %c0_i32_0 = arith.constant 0 : i32
    %c0_i32_1 = arith.constant 0 : i32
    return %arg0, %c0_i32, %c0_i32_0 : i32, i32, i32
  }
  func.func @transform_1(%arg0: i32) -> (i32, i32, i32) {
    %c0_i32 = arith.constant 0 : i32
    %c0_i32_0 = arith.constant 0 : i32
    %c0_i32_1 = arith.constant 0 : i32
    return %arg0, %c0_i32, %c0_i32_0 : i32, i32, i32
  }
  func.func @transform_2(%arg0: i32) -> (i32, i32) {
    %c0_i32 = arith.constant 0 : i32
    %c0_i32_0 = arith.constant 0 : i32
    return %arg0, %c0_i32 : i32, i32
  }
  func.func @transform_3(%arg0: i32) -> (i32, i32) {
    %c0_i32 = arith.constant 0 : i32
    %c0_i32_0 = arith.constant 0 : i32
    return %arg0, %c0_i32 : i32, i32
  }
  func.func @transform_4(%arg0: i32) -> (i32, i32) {
    %c0_i32 = arith.constant 0 : i32
    %c0_i32_0 = arith.constant 0 : i32
    return %arg0, %c0_i32 : i32, i32
  }
  func.func @transform_5(%arg0: i32) -> (i32, i32) {
    %c0_i32 = arith.constant 0 : i32
    %c0_i32_0 = arith.constant 0 : i32
    return %arg0, %c0_i32 : i32, i32
  }
}

</mosaic_0001>

<bundles_post_ra>
// kernel: tpu_custom_call.1
= control target key start
LH: loop header
LB: loop body
LE: loop exit
PB: predicated region body
PF: predicated region fallthrough
CT: control target
= control target key end

     0   :  { %vm59_vm0 = vcmask 260096   ;;  %s772_s0 = inlined_call_operand.vmem [shape: f32[8,7,32], index: 0, kind: input, shape index: {}]   ;;  %s773_s1 = inlined_call_operand.vmem [shape: s8[8,7,32], index: 1, kind: input, shape index: {}]   ;;  %s774_s2 = inlined_call_operand.vmem [shape: f32[8,7], index: 2, kind: input, shape index: {}]   ;;  %s775_s3 = inlined_call_operand.hbm [shape: f32[8,7], index: 3, kind: output, shape index: {0}]   ;;  %s776_s4 = inlined_call_operand.vmem [shape: s32[8,1], index: 4, kind: output, shape index: {1}]   ;;  %s777_s5 = inlined_call_operand.vmem [shape: f32[8,1], index: 5, kind: output, shape index: {2}]  }
   0x1   :  { %v438_v0 = vld [vmem:[%s773_s1] sm:$0xff]   ;;  %v20_v3 = vld [vmem:[%s772_s0 + $0x10] sm:$0x7f]  ;;  %v19_v7 = vld [vmem:[%s772_s0 + $0x8] sm:$0x7f] }
   0x2   :  { %v18_v1 = vld [vmem:[%s772_s0] sm:$0x7f]  ;;  %v439_v2 = vunpack.c.0.s8 %v438_v0  ;;  %v443_v4 = vunpack.c.2.s8 %v438_v0  ;;  %v440_v5 = vunpack.c.1.s8 %v438_v0  ;;  %v444_v6 = vunpack.c.3.s8 %v438_v0  ;;  %v21_v8 = vld [vmem:[%s772_s0 + $0x18] sm:$0x7f]  ;;  %v454_v9 = vld [vmem:[%s773_s1 + $0x8] sm:$0xff]  }
   0x4   :  { %v42_v10 = vcvt.s32.f32 %v439_v2  ;;  %v44_v11 = vcvt.s32.f32 %v443_v4  ;;  %v43_v12 = vcvt.s32.f32 %v440_v5  ;;  %v45_v13 = vcvt.s32.f32 %v444_v6 }
   0x5   :  { %11 = vsyncpa [#allocation3], 0  ;;  %v447_v14 = vunpack.c.0.s8 %v454_v9  ;;  %v448_v15 = vunpack.c.1.s8 %v454_v9  ;;  %v451_v16 = vunpack.c.2.s8 %v454_v9  ;;  %v452_v17 = vunpack.c.3.s8 %v454_v9  ;;  %v22_v22 = vld [vmem:[%s772_s0 + $0x20] sm:$0x7f]  ;;  %v23_v24 = vld [vmem:[%s772_s0 + $0x28] sm:$0x7f] }
   0x6   :  { %v51_v18 = vmul.f32 %v42_v10, %v18_v1  ;;  %v53_v19 = vmul.f32 %v44_v11, %v20_v3  ;;  %v52_v20 = vmul.f32 %v43_v12, %v19_v7  ;;  %v54_v21 = vmul.f32 %v45_v13, %v21_v8  ;;  %v24_v34 = vld [vmem:[%s772_s0 + $0x30] sm:$0x7f]  ;;  %v25_v35 = vld [vmem:[%s772_s0 + $0x38] sm:$0x7f]  ;;  %v626_v61 = vld [vmem:[%s774_s2] sm:$0xff]  ;;  %s521_s14 = smov [#allocation2]  }
   0x7   :  { %v46_v23 = vcvt.s32.f32 %v447_v14  ;;  %v47_v25 = vcvt.s32.f32 %v448_v15  ;;  %v48_v28 = vcvt.s32.f32 %v451_v16  ;;  %v49_v29 = vcvt.s32.f32 %v452_v17  ;;  %s420_s15 = sshll.u32 %s521_s14, 4  ;;  %s421_s15 = int_to_ptr.vmem [resolvable:$true] %s420_s15 }
   0x8   :  { %v60_v26 = vsel %vm59_vm0, %v51_v18, 0.0  ;;  %v66_v27 = vsel %vm59_vm0, %v53_v19, 0.0  ;;  %v63_v30 = vsel %vm59_vm0, %v52_v20, 0.0  ;;  %v69_v31 = vsel %vm59_vm0, %v54_v21, 0.0  ;;  %s495_s16 = scalar_lea.vmem %s421_s15, 128  ;;  %p500_p1 = scmp.lt.s32.totalorder %s421_s15, %s421_s15 }
   0x9   :  { %61 = vadd.xlane.f32.xlu0 %v60_v26  ;;  %67 = vadd.xlane.f32.xlu1 %v66_v27  ;;  %v55_v32 = vmul.f32 %v46_v23, %v22_v22  ;;  %v56_v33 = vmul.f32 %v47_v25, %v23_v24  ;;  %v57_v38 = vmul.f32 %v48_v28, %v24_v34  ;;  %v84_v42 = vlaneseq  ;;  %p496_p0 = scmp.ne.s32.totalorder %s421_s15, %s495_s16  ;;  %p501_p2 = scmp.lt.s32.totalorder %s495_s16, %s495_s16 }
   0xa   :  { %v58_v39 = vmul.f32 %v49_v29, %v25_v35  ;;  %v519_v44 = vmov 0   ;;  %vm161_vm1 = vcmask 1041409   ;;  %vm163_vm2 = vcmask 1042434  }
   0xb   :  { %v72_v36 = vsel %vm59_vm0, %v55_v32, 0.0  ;;  %v75_v37 = vsel %vm59_vm0, %v56_v33, 0.0  ;;  %v78_v40 = vsel %vm59_vm0, %v57_v38, 0.0  ;;  %v590_v43 = vand.u32 127, %v84_v42  ;;  %460 = vset.pattern.permute.xlu0 %v519_v44  ;;  %459 = vset.pattern.permute.xlu1 %v519_v44  ;;  %p502_p3 = por %p501_p2, %p500_p1 }
   0xc   :  { %v81_v41 = vsel %vm59_vm0, %v58_v39, 0.0  ;;  %v130_v45 = vshrl.u32 %v84_v42, 7  ;;  %vm165_vm3 = vcmask 1043459   ;;  %vm167_vm5 = vcmask 1044484  }
   0xd   :  { %64 = vadd.xlane.f32.xlu0 %v63_v30  ;;  %70 = vadd.xlane.f32.xlu1 %v69_v31  ;;  %v301_v3 = vsub.f32 1.0, %v626_v61  ;;  %vm169_vm10 = vcmask 1045509   ;;  %vm171_vm12 = vcmask 1046534   ;;  %vm173_vm13 = vcmask 1047559   ;;  %p503_p4 = pnand %p502_p3, %p496_p0 }
   0xe   :  { %v594_v46 = vsub.s32 %v590_v43, %v130_v45  ;;  %vm175_vm14 = vcmask 56320  }
  0x11   :  { %73 = vadd.xlane.f32.xlu0 %v72_v36  ;;  %76 = vadd.xlane.f32.xlu1 %v75_v37 }
  0x15   :  { %79 = vadd.xlane.f32.xlu0 %v78_v40  ;;  %82 = vadd.xlane.f32.xlu1 %v81_v41 }
  0x2b   :  { %95 = vbcast.lane.b32.xlu0 %v590_v43, 256 }
  0x96   :  { %v596_v47 = vpop.xlane.xlu0 %61  ;;  %v598_v48 = vpop.xlane.xlu1 %67 }
  0x97   :  { %461 = vlog2.f32 %v596_v47  ;;  %v220_v49 = vsub.f32 1.0, %v596_v47  ;;  %v222_v50 = vsub.f32 1.0, %v598_v48  ;;  %v375_v51 = vrot.slane %v596_v47, %v594_v46 }
  0x98   :  { %463 = vlog2.f32 %v598_v48  ;;  %v383_v57 = vrot.slane %v598_v48, %v594_v46  ;;  %vm86_vm4 = vcmp.gt.f32.partialorder %v596_v47, 0.0  ;;  %vm88_vm8 = vcmp.gt.f32.partialorder %v598_v48, 0.0 }
  0x99   :  { %465 = vlog2.f32 %v220_v49 }
  0x9a   :  { %467 = vlog2.f32 %v222_v50  ;;  %v606_v52 = vpop.xlane.xlu0 %64  ;;  %v608_v53 = vpop.xlane.xlu1 %70 }
  0x9b   :  { %469 = vlog2.f32 %v606_v52  ;;  %v221_v54 = vsub.f32 1.0, %v606_v52  ;;  %v379_v55 = vrot.slane %v606_v52, %v594_v46  ;;  %v223_v56 = vsub.f32 1.0, %v608_v53 }
  0x9c   :  { %471 = vlog2.f32 %v608_v53  ;;  %v387_v62 = vrot.slane %v608_v53, %v594_v46  ;;  %vm89_vm6 = vcmp.gt.f32.partialorder %v608_v53, 0.0  ;;  %vm87_vm7 = vcmp.gt.f32.partialorder %v606_v52, 0.0 }
  0x9d   :  { %473 = vlog2.f32 %v221_v54  ;;  %v404_v58 = vsel %vm161_vm1, %v379_v55, %v375_v51 }
  0x9e   :  { %475 = vlog2.f32 %v223_v56  ;;  %v619_v59 = vpop.xlane.xlu0 %73  ;;  %v621_v60 = vpop.xlane.xlu1 %76  ;;  %v405_v1 = vsel %vm163_vm2, %v383_v57, %v404_v58 }
  0x9f   :  { %477 = vlog2.f32 %v619_v59  ;;  %v224_v63 = vsub.f32 1.0, %v619_v59  ;;  %v225_v0 = vsub.f32 1.0, %v621_v60  ;;  %v391_v6 = vrot.slane %v619_v59, %v594_v46 }
  0xa0   :  { %479 = vlog2.f32 %v621_v60  ;;  %v406_v12 = vsel %vm165_vm3, %v387_v62, %v405_v1  ;;  %v395_v15 = vrot.slane %v621_v60, %v594_v46  ;;  %vm90_vm9 = vcmp.gt.f32.partialorder %v619_v59, 0.0 }
  0xa1   :  { %v462_v2 = vpop.eup %461  ;;  %481 = vlog2.f32 %v224_v63  ;;  %v657_v25 = vsel %vm167_vm5, %v391_v6, %v406_v12  ;;  %vm91_vm15 = vcmp.gt.f32.partialorder %v621_v60, 0.0 }
  0xa2   :  { %v464_v4 = vpop.eup %463  ;;  %v197_v5 = vmul.f32 0.6931472, %v462_v2  ;;  %483 = vlog2.f32 %v225_v0  ;;  %v639_v7 = vpop.xlane.xlu0 %79 }
  0xa3   :  { %v641_v8 = vpop.xlane.xlu1 %82  ;;  %v466_v9 = vpop.eup %465  ;;  %v201_v10 = vmul.f32 0.6931472, %v464_v4  ;;  %485 = vlog2.f32 %v639_v7  ;;  %v226_v11 = vsub.f32 1.0, %v639_v7  ;;  %v399_v29 = vrot.slane %v639_v7, %v594_v46 }
  0xa4   :  { %v468_v13 = vpop.eup %467  ;;  %v229_v14 = vmul.f32 0.6931472, %v466_v9  ;;  %487 = vlog2.f32 %v641_v8  ;;  %v227_v16 = vsub.f32 1.0, %v641_v8  ;;  %v212_v18 = vmax.f32 %v197_v5, -100.0 }
  0xa5   :  { %v470_v17 = vpop.eup %469  ;;  %v214_v19 = vmax.f32 %v201_v10, -100.0  ;;  %v233_v20 = vmul.f32 0.6931472, %v468_v13  ;;  %489 = vlog2.f32 %v226_v11  ;;  %v403_v34 = vrot.slane %v641_v8, %v594_v46 }
  0xa6   :  { %v472_v21 = vpop.eup %471  ;;  %v244_v22 = vmax.f32 %v229_v14, -100.0  ;;  %v199_v23 = vmul.f32 0.6931472, %v470_v17  ;;  %491 = vlog2.f32 %v227_v16  ;;  %v653_v24 = vpop.permute.xlu0 %95  ;;  %v263_v37 = vrot.slane %v212_v18, %v594_v46 }
  0xa7   :  { %v474_v26 = vpop.eup %473  ;;  %v246_v27 = vmax.f32 %v233_v20, -100.0  ;;  %v203_v28 = vmul.f32 0.6931472, %v472_v21  ;;  %v100_v30 = vsel %vm89_vm6, %v653_v24, 7  ;;  %v97_v35 = vsel %vm86_vm4, %v653_v24, 7 }
  0xa8   :  { %v476_v31 = vpop.eup %475  ;;  %v213_v32 = vmax.f32 %v199_v23, -100.0  ;;  %v231_v33 = vmul.f32 0.6931472, %v474_v26  ;;  %115 = vperm.xlu0 %460, %v100_v30   ;;  %v271_v38 = vrot.slane %v214_v19, %v594_v46  ;;  %106 = vperm.xlu1 %459, %v97_v35   ;;  %v313_v42 = vrot.slane %v244_v22, %v594_v46 }
  0xa9   :  { %v478_v36 = vpop.eup %477  ;;  %v215_v39 = vmax.f32 %v203_v28, -100.0  ;;  %v235_v40 = vmul.f32 0.6931472, %v476_v31  ;;  %vm92_vm11 = vcmp.gt.f32.partialorder %v639_v7, 0.0  ;;  %v321_v47 = vrot.slane %v246_v27, %v594_v46 }
  0xaa   :  { %v480_v41 = vpop.eup %479  ;;  %v245_v44 = vmax.f32 %v231_v33, -100.0  ;;  %v205_v45 = vmul.f32 0.6931472, %v478_v36  ;;  %v103_v53 = vsel %vm92_vm11, %v653_v24, 7  ;;  %v267_v55 = vrot.slane %v213_v32, %v594_v46 }
  0xab   :  { %v482_v49 = vpop.eup %481  ;;  %v247_v50 = vmax.f32 %v235_v40, -100.0  ;;  %v207_v51 = vmul.f32 0.6931472, %v480_v41  ;;  %v98_v58 = vsel %vm87_vm7, %v653_v24, 7  ;;  %v275_v0 = vrot.slane %v215_v39, %v594_v46 }
  0xac   :  { %v484_v54 = vpop.eup %483  ;;  %v216_v56 = vmax.f32 %v205_v45, -100.0  ;;  %v237_v57 = vmul.f32 0.6931472, %v482_v49  ;;  %124 = vperm.xlu0 %460, %v103_v53   ;;  %v317_v63 = vrot.slane %v245_v44, %v594_v46  ;;  %109 = vperm.xlu1 %459, %v98_v58   ;;  %v99_v52 = vsel %vm88_vm8, %v653_v24, 7 }
  0xad   :  { %v486_v62 = vpop.eup %485  ;;  %v217_v1 = vmax.f32 %v207_v51, -100.0  ;;  %v239_v2 = vmul.f32 0.6931472, %v484_v54  ;;  %v325_v5 = vrot.slane %v247_v50, %v594_v46  ;;  %v101_v14 = vsel %vm90_vm9, %v653_v24, 7 }
  0xae   :  { %v488_v4 = vpop.eup %487  ;;  %v248_v6 = vmax.f32 %v237_v57, -100.0  ;;  %v209_v9 = vmul.f32 0.6931472, %v486_v62  ;;  %v279_v11 = vrot.slane %v216_v56, %v594_v46  ;;  %v292_v23 = vsel %vm161_vm1, %v267_v55, %v263_v37 }
  0xaf   :  { %v490_v10 = vpop.eup %489  ;;  %v249_v12 = vmax.f32 %v239_v2, -100.0  ;;  %v211_v13 = vmul.f32 0.6931472, %v488_v4  ;;  %v283_v18 = vrot.slane %v217_v1, %v594_v46  ;;  %v342_v59 = vsel %vm161_vm1, %v317_v63, %v313_v42 }
  0xb0   :  { %v492_v16 = vpop.eup %491  ;;  %v329_v17 = vrot.slane %v248_v6, %v594_v46  ;;  %v218_v19 = vmax.f32 %v209_v9, -100.0  ;;  %v241_v20 = vmul.f32 0.6931472, %v490_v10  ;;  %112 = vperm.xlu1 %459, %v99_v52   ;;  %v293_v28 = vsel %vm163_vm2, %v271_v38, %v292_v23 }
  0xb1   :  { %v333_v21 = vrot.slane %v249_v12, %v594_v46  ;;  %v219_v48 = vmax.f32 %v211_v13, -100.0  ;;  %v243_v22 = vmul.f32 0.6931472, %v492_v16  ;;  %v343_v32 = vsel %vm163_vm2, %v321_v47, %v342_v59 }
  0xb2   :  { %v250_v26 = vmax.f32 %v241_v20, -100.0  ;;  %v287_v27 = vrot.slane %v218_v19, %v594_v46  ;;  %v294_v33 = vsel %vm165_vm3, %v275_v0, %v293_v28  ;;  %v344_v37 = vsel %vm165_vm3, %v325_v5, %v343_v32 }
  0xb3   :  { %v251_v30 = vmax.f32 %v243_v22, -100.0  ;;  %v291_v31 = vrot.slane %v219_v48, %v594_v46  ;;  %v295_v36 = vsel %vm167_vm5, %v279_v11, %v294_v33  ;;  %v408_v39 = vsel %vm169_vm10, %v395_v15, %v657_v25 }
  0xb4   :  { %v337_v35 = vrot.slane %v250_v26, %v594_v46  ;;  %118 = vperm.xlu1 %459, %v101_v14   ;;  %v345_v40 = vsel %vm167_vm5, %v329_v17, %v344_v37  ;;  %v296_v41 = vsel %vm169_vm10, %v283_v18, %v295_v36  ;;  %v409_v42 = vsel %vm171_vm12, %v399_v29, %v408_v39 }
  0xb5   :  { %v341_v38 = vrot.slane %v251_v30, %v594_v46  ;;  %v297_v44 = vsel %vm171_vm12, %v287_v27, %v296_v41  ;;  %v346_v45 = vsel %vm169_vm10, %v333_v21, %v345_v40  ;;  %v410_v15 = vsel %vm173_vm13, %v403_v34, %v409_v42 }
  0xb6   :  { %v298_v25 = vsel %vm173_vm13, %v291_v31, %v297_v44  ;;  %v347_v49 = vsel %vm171_vm12, %v337_v35, %v346_v45  ;;  %412 = vst.msk [vmem:[#allocation2] sm:$0xff] %vm175_vm14, %v410_v15  ;;  %v102_v7 = vsel %vm91_vm15, %v653_v24, 7  ;;  %vm93_vm0 = vcmp.gt.f32.partialorder %v641_v8, 0.0 }
  0xb7   :  { %v348_v29 = vsel %vm173_vm13, %v341_v38, %v347_v49  ;;  %v300_v47 = vmul.f32 %v298_v25, %v626_v61  ;;  %v104_v51 = vsel %vm93_vm0, %v653_v24, 7  ;;  %v520_v27 = vmov 0.0  }
  0xb8   :  { %121 = vperm.xlu1 %459, %v102_v7   ;;  %v350_v34 = vmul.f32 %v348_v29, %v301_v3 }
  0xba   :  { %v351_v50 = vadd.f32 %v350_v34, %v300_v47 }
  0xbc   :  { %127 = vperm.xlu1 %459, %v104_v51   ;;  %v352_v26 = vsub.f32 0.0, %v351_v50 }
 0x127   :  { %v107_v53 = vpop.permute.xlu1 %106  ;;  %v116_v57 = vpop.permute.xlu0 %115 }
 0x128   :  { %v132_v58 = vrot.slane %v107_v53, %v594_v46  ;;  %v144_v24 = vrot.slane %v116_v57, %v594_v46 }
 0x12b   :  { %v110_v54 = vpop.permute.xlu1 %109  ;;  %v125_v0 = vpop.permute.xlu0 %124 }
 0x12c   :  { %v136_v60 = vrot.slane %v110_v54, %v594_v46  ;;  %v156_v6 = vrot.slane %v125_v0, %v594_v46 }
 0x12e   :  { %v162_v62 = vsel %vm161_vm1, %v136_v60, %v132_v58 }
 0x12f   :  { %v113_v55 = vpop.permute.xlu1 %112 }
 0x130   :  { %v140_v56 = vrot.slane %v113_v55, %v594_v46 }
 0x132   :  { %v164_v61 = vsel %vm163_vm2, %v140_v56, %v162_v62  ;;  %vm362_vm2 = vcmask 7168  }
 0x133   :  { %v119_v8 = vpop.permute.xlu1 %118  ;;  %v166_v1 = vsel %vm165_vm3, %v144_v24, %v164_v61 }
 0x134   :  { %v148_v3 = vrot.slane %v119_v8, %v594_v46 }
 0x136   :  { %v168_v4 = vsel %vm167_vm5, %v148_v3, %v166_v1 }
 0x137   :  { %v122_v63 = vpop.permute.xlu1 %121 }
 0x138   :  { %v152_v2 = vrot.slane %v122_v63, %v594_v46 }
 0x13a   :  { %v170_v5 = vsel %vm169_vm10, %v152_v2, %v168_v4 }
 0x13b   :  { %v128_v9 = vpop.permute.xlu1 %127  ;;  %v172_v10 = vsel %vm171_vm12, %v156_v6, %v170_v5 }
 0x13c   :  { %v160_v52 = vrot.slane %v128_v9, %v594_v46 }
 0x13e   :  { %v174_v11 = vsel %vm173_vm13, %v160_v52, %v172_v10 }
 0x13f   :  { %v176_v12 = vsel %vm175_vm14, %v174_v11, 2147483647 }
 0x140   :  { %v178_v13 = vshra.s32 %v176_v12, 16  ;;  %v177_v16 = vand.u32 65535, %v176_v12 }
 0x142   :  { %v180_v14 = vcvt.s32.f32 %v178_v13  ;;  %v179_v18 = vcvt.s32.f32 %v177_v16 }
 0x144   :  { %181 = vmin.xlane.f32.xlu0 %v180_v14 }
 0x1d1   :  { %v182_v17 = vpop.xlane.xlu0 %181 }
 0x1d2   :  { %vm183_vm1 = vcmp.eq.f32.partialorder %v180_v14, %v182_v17  ;;  %v188_v20 = vcvt.f32.s32 %v182_v17 }
 0x1d3   :  { %v184_v19 = vsel %vm183_vm1, %v179_v18, inf }
 0x1d4   :  { %185 = vmin.xlane.f32.xlu1 %v184_v19  ;;  %v189_v48 = vshll.u32 %v188_v20, 16 }
 0x261   :  { %v186_v21 = vpop.xlane.xlu1 %185 }
 0x262   :  { %v187_v22 = vcvt.f32.s32 %v186_v21 }
 0x264   :  { %v190_v46 = vadd.s32 %v189_v48, %v187_v22 }
 0x266   :  { %vm191_vm3 = vcmp.eq.s32.totalorder %v190_v46, 7 }
 0x267   :  { %v192_v23 = vsel %vm191_vm3, 0, %v190_v46 }
 0x268   :  { %vm193_vm4 = vcmp.ge.s32.totalorder %v590_v43, %v192_v23  ;;  %413 = vst.msk [vmem:[%s776_s4] sm:$0xff] %vm362_vm2, %v192_v23 }
 0x269   :  { %v436_v59 = vsel %vm193_vm4, 1.0, %v520_v27 }
 0x26a   :  { %v357_v28 = vsel %vm175_vm14, %v436_v59, 0.0  ;;  %v353_v30 = vmul.f32 %v436_v59, %v352_v26 }
 0x26b   :  { %358 = vadd.xlane.f32.xlu0 %v357_v28 }
 0x26c   :  { %v354_v31 = vsel %vm175_vm14, %v353_v30, 0.0 }
 0x26f   :  { %355 = vadd.xlane.f32.xlu0 %v354_v31 }
 0x270   :  { %506 = shalt.err (!%p503_p4)
}
 0x271   :  { %s507_s18 = scalar_lea.hbm %s775_s3, 128 }
 0x272   :  { %p508_p5 = scmp.ne.s32.totalorder %s775_s3, %s507_s18  ;;  %p511_p6 = scmp.lt.u32.totalorder %s507_s18, %s775_s3 }
 0x274   :  { %p513_p7 = pnand %p511_p6, %p508_p5 }
 0x276   :  { %516 = shalt.err (!%p513_p7)
}
 0x277   :  { %423 = dma.vmem_to_hbm [thread:$0]  %s421_s15, 128, %s775_s3, [#allocation3]  }
 0x2f8   :  { %v359_v43 = vpop.xlane.xlu0 %358 }
 0x2f9   :  { %493 = vrcp.f32 %v359_v43 }
 0x2fc   :  { %v356_v33 = vpop.xlane.xlu0 %355 }
 0x303   :  { %v494_v32 = vpop.eup %493 }
 0x304   :  { %v361_v35 = vmul.f32 %v494_v32, %v356_v33 }
 0x306   :  { %363 = vst.msk [vmem:[%s777_s5] sm:$0xff] %vm362_vm2, %v361_v35 }
 0x307   :  { %517 = dma.done.wait [#allocation3], 128  }
 0x308   :  { %518 = vsyncadd [#allocation3], 4294967168 }
 0x309   :  { %435 = vsyncpa [#allocation3], 1 }

</bundles_post_ra>
